<compile_context>
chip_gen: v7x
topology: tpu7x:2x2x1
jax: 0.10.0
libtpu: 0.0.40
codegen_flags: <defaults>
</compile_context>

<pallas_src>
import jax
import jax.numpy as jnp
from jax.experimental import pallas as pl
from jax.experimental.pallas import tpu as pltpu


# ----------------------------- helpers ------------------------------------ #

def _masked_softmax(scores, mask):
    """Softmax along the last (lane) axis with torch-style masking.

    scores: (Bb, S) f32; mask: (Bb, S) int32, nonzero = masked.
    Matches masked_fill(-inf) -> softmax -> masked_fill(0).
    """
    masked = mask != 0
    s = jnp.where(masked, -jnp.inf, scores)
    m = jnp.max(s, axis=-1, keepdims=True)
    e = jnp.exp(s - m)
    den = jnp.sum(e, axis=-1, keepdims=True)
    soft = e * pl.reciprocal(den, approx=True)       # EUP slot, ~free vs divide
    return jnp.where(masked, jnp.float32(0.0), soft)


# ----------------------------- kernels ------------------------------------ #

def _no_query_kernel(eo_ref, w_ref, b_ref, mask_ref, out_ref):
    # attn = Linear(2H -> 1)(encoder_output): mat-vec -> VPU mul + lane reduce.
    scores = jnp.sum(eo_ref[...] * w_ref[...], axis=-1) + b_ref[0]      # (Bb, S)
    out_ref[...] = _masked_softmax(scores, mask_ref[...])


def _dot_kernel(eo_ref, hid_ref, mask_ref, out_ref):
    # attn = bmm(encoder_output, hidden): batched mat-vec on the VPU.
    scores = jnp.sum(eo_ref[...] * hid_ref[...][:, None, :], axis=-1)   # (Bb, S)
    out_ref[...] = _masked_softmax(scores, mask_ref[...])


def _general_kernel(eo_ref, hid_ref, wt_ref, b_ref, mask_ref, out_ref):
    # energy = tanh(eo @ W^T + b)  : ONE folded (Bb*S, D) @ (D, D) bf16 matmul
    # attn   = bmm(energy, hidden) : VPU broadcast-mul + lane reduce
    bb, s, d = eo_ref.shape
    eo2 = eo_ref[...].reshape(bb * s, d).astype(wt_ref.dtype)   # cast in-register
    energy = jnp.tanh(
        jnp.dot(eo2, wt_ref[...], preferred_element_type=jnp.float32)
        + b_ref[...]).reshape(bb, s, d)
    scores = jnp.sum(energy * hid_ref[...][:, None, :], axis=-1)        # (Bb, S)
    out_ref[...] = _masked_softmax(scores, mask_ref[...])


def _concat_kernel(eo_ref, hpart_ref, w2t_ref, b_ref, v_ref, vb_ref,
                   mask_ref, out_ref):
    # cat([hidden_expand, eo], 2) @ Wc^T == hidden@W1^T (hoisted to wrapper)
    #                                       + eo@W2^T   (one folded MXU matmul)
    bb, s, d = eo_ref.shape
    eo2 = eo_ref[...].reshape(bb * s, d).astype(w2t_ref.dtype)
    e_part = jnp.dot(eo2, w2t_ref[...], preferred_element_type=jnp.float32)
    energy = jnp.tanh(e_part.reshape(bb, s, d)
                      + hpart_ref[...][:, None, :] + b_ref[...])        # (Bb,S,D)
    scores = jnp.sum(energy * v_ref[...], axis=-1) + vb_ref[0]          # (Bb, S)
    out_ref[...] = _masked_softmax(scores, mask_ref[...])


# ----------------------------- wrapper ------------------------------------ #

def _tpu_vmem_bytes():
    try:
        return int(pltpu.get_tpu_info().vmem_capacity_bytes)
    except Exception:
        return 64 << 20                      # conservative (v7x per-TC VMEM)


def _pick_batch_block(B, S, D, itemsize, vmem_bytes):
    """Choose batches-per-grid-step and the padded batch size.

    The eo block is double-buffered by the pipeline, so budget ~1/8 of the
    chip's VMEM per buffer (big blocks on v5e/v6e's 128 MiB, capped on v7x's
    64 MiB).  Odd/prime B is padded up to a multiple of the block instead of
    collapsing the block to 1 (many tiny grid steps)."""
    budget = max(vmem_bytes // 8, 1 << 20)
    per_batch = max(S * D * itemsize, 1)
    bb = max(1, budget // per_batch)
    if bb >= B:
        return B, B                          # single grid step, block == array
    bb = max(8, (bb // 8) * 8)               # keep (8, *)-aligned sublane blocks
    b_pad = -(-B // bb) * bb
    return bb, b_pad


def attention_forward(method, params, encoder_output, hidden, attn_mask=None):
    """Pallas equivalent of Attention.forward(encoder_output, hidden, attn_mask).

    encoder_output: (B, S, 2H); hidden: (B, 2H, 1); attn_mask: (B, S) bool.
    Returns softmax attention weights of shape (B, S).
    """
    B, S, D = encoder_output.shape                     # D == 2 * hidden_size

    eo = encoder_output.astype(jnp.float32)            # no wrapper bf16 pass
    hid_row = jnp.reshape(hidden, (B, D)).astype(jnp.float32)
    if attn_mask is None:
        mask = jnp.zeros((B, S), jnp.int32)
    else:
        mask = attn_mask.astype(jnp.int32).reshape(B, S)

    vmem = _tpu_vmem_bytes()
    bb, b_pad = _pick_batch_block(B, S, D, eo.dtype.itemsize, vmem)
    if b_pad != B:
        eo = jnp.pad(eo, ((0, b_pad - B), (0, 0), (0, 0)))
        hid_row = jnp.pad(hid_row, ((0, b_pad - B), (0, 0)))
        mask = jnp.pad(mask, ((0, b_pad - B), (0, 0)))

    grid = (b_pad // bb,)
    cp = pltpu.CompilerParams(dimension_semantics=("parallel",),
                              vmem_limit_bytes=int(vmem // 2))

    eo_spec = pl.BlockSpec((bb, S, D), lambda i: (i, 0, 0))
    row_spec = pl.BlockSpec((bb, D), lambda i: (i, 0))          # hidden rows
    mask_spec = pl.BlockSpec((bb, S), lambda i: (i, 0))
    out_spec = pl.BlockSpec((bb, S), lambda i: (i, 0))          # dense 2-D out
    out_shape = jax.ShapeDtypeStruct((b_pad, S), jnp.float32)

    def full_vmem(a):              # small weight, fully resident in VMEM
        nd = a.ndim
        return pl.BlockSpec(a.shape, lambda i, _n=nd: (0,) * _n)

    smem_spec = pl.BlockSpec(memory_space=pltpu.MemorySpace.SMEM)

    # NOTE: the (D, D) weights are kept fully resident; for very large D they
    # would need K-tiling (HAN hidden sizes are small, so kept simple here).

    if method == 'no_query':
        w_row = params['W'].astype(jnp.float32).reshape(1, D)
        b = params['b'].astype(jnp.float32).reshape(1)
        out = pl.pallas_call(
            _no_query_kernel, out_shape=out_shape, grid=grid,
            in_specs=[eo_spec, full_vmem(w_row), smem_spec, mask_spec],
            out_specs=out_spec, compiler_params=cp,
        )(eo, w_row, b, mask)

    elif method == 'dot':
        out = pl.pallas_call(
            _dot_kernel, out_shape=out_shape, grid=grid,
            in_specs=[eo_spec, row_spec, mask_spec],
            out_specs=out_spec, compiler_params=cp,
        )(eo, hid_row, mask)

    elif method == 'general':
        wt = params['W'].T.astype(jnp.bfloat16)        # (D, D), (in, out)
        b = params['b'].astype(jnp.float32).reshape(1, D)
        out = pl.pallas_call(
            _general_kernel, out_shape=out_shape, grid=grid,
            in_specs=[eo_spec, row_spec, full_vmem(wt), full_vmem(b), mask_spec],
            out_specs=out_spec, compiler_params=cp,
        )(eo, hid_row, wt, b, mask)

    elif method == 'concat':
        W = params['W'].astype(jnp.float32)            # (D, 2D) torch (out, in)
        # Hoisted S-independent hidden projection: one (B, D) @ (D, D) matmul
        # in the wrapper instead of an N=1 MXU call per batch in-kernel.
        hpart = (hid_row @ W[:, :D].T).astype(jnp.float32)     # (b_pad, D)
        w2t = W[:, D:].T.astype(jnp.bfloat16)          # encoder part, (D, D)
        b = params['b'].astype(jnp.float32).reshape(1, D)
        v_row = params['V'].astype(jnp.float32).reshape(1, D)
        vb = params['Vb'].astype(jnp.float32).reshape(1)
        out = pl.pallas_call(
            _concat_kernel, out_shape=out_shape, grid=grid,
            in_specs=[eo_spec, row_spec, full_vmem(w2t), full_vmem(b),
                      full_vmem(v_row), smem_spec, mask_spec],
            out_specs=out_spec, compiler_params=cp,
        )(eo, hpart, w2t, b, v_row, vb, mask)
    else:
        raise ValueError(f"unknown method: {method}")

    return out[:B]                                     # drop batch padding


# --------------------------- pure-JAX reference ---------------------------- #

def attention_reference(method, params, eo, hidden, attn_mask=None):
    if method == 'no_query':
        attn = jnp.einsum('bsd,od->bso', eo, params['W'])[..., 0] + params['b'][0, 0]
    elif method == 'dot':
        attn = jnp.einsum('bsd,bdo->bso', eo, hidden)[..., 0]
    elif method == 'general':
        energy = jnp.tanh(jnp.einsum('bsd,od->bso', eo, params['W']) + params['b'])
        attn = jnp.einsum('bso,bok->bsk', energy, hidden)[..., 0]
    elif method == 'concat':
        B, S, D = eo.shape
        hid_t = jnp.transpose(hidden, (0, 2, 1))            # (B, 1, D)
        hid_exp = jnp.broadcast_to(hid_t, (B, S, D))
        cat = jnp.concatenate([hid_exp, eo], axis=2)        # (B, S, 2D)
        energy = jnp.tanh(jnp.einsum('bsc,oc->bso', cat, params['W']) + params['b'])
        attn = jnp.einsum('bso,ko->bsk', energy, params['V'])[..., 0] + params['Vb'][0, 0]
    if attn_mask is not None:
        attn = jnp.where(attn_mask, -jnp.inf, attn)
    soft = jax.nn.softmax(attn, axis=1)
    if attn_mask is not None:
        soft = jnp.where(attn_mask, 0.0, soft)
    return soft


# --------------------------------- main ------------------------------------ #

if __name__ == "__main__":
    key = jax.random.PRNGKey(0)
    B, S, H = 2, 8, 16
    D = 2 * H                                               # hidden_size * 2

    ks = jax.random.split(key, 10)
    encoder_output = jax.random.normal(ks[0], (B, S, D), jnp.float32)
    hidden = jax.random.normal(ks[1], (B, D, 1), jnp.float32)
    attn_mask = jnp.zeros((B, S), dtype=bool).at[0, S - 2:].set(True).at[1, 2].set(True)

    params = {
        'no_query': {'W': 0.1 * jax.random.normal(ks[2], (1, D), jnp.float32),
                     'b': 0.1 * jax.random.normal(ks[3], (1, 1), jnp.float32)},
        'dot': {},
        'general': {'W': 0.1 * jax.random.normal(ks[4], (D, D), jnp.float32),
                    'b': 0.1 * jax.random.normal(ks[5], (1, D), jnp.float32)},
        'concat': {'W': 0.1 * jax.random.normal(ks[6], (D, 2 * D), jnp.float32),
                   'b': 0.1 * jax.random.normal(ks[7], (1, D), jnp.float32),
                   'V': 0.1 * jax.random.normal(ks[8], (1, D), jnp.float32),
                   'Vb': 0.1 * jax.random.normal(ks[9], (1, 1), jnp.float32)},
    }

    # f32 paths: tight tolerance (approx reciprocal only); bf16 MXU paths: looser.
    tols = {'no_query': 2e-3, 'dot': 2e-3, 'general': 5e-2, 'concat': 5e-2}

    ok = True
    for method in ('no_query', 'dot', 'general', 'concat'):
        out = attention_forward(method, params[method], encoder_output, hidden, attn_mask)
        out = jax.block_until_ready(out)
        ref = attention_reference(method, params[method], encoder_output, hidden, attn_mask)
        tol = tols[method]
        if not bool(jnp.allclose(out, ref, atol=tol, rtol=tol)):
            ok = False
            print(f"MISMATCH in method={method}: max abs diff "
                  f"{float(jnp.max(jnp.abs(out - ref)))}")

    if ok:
        print("KERNEL_OK")
</pallas_src>

<mosaic_0001>
module attributes {stable_mosaic.version = 11 : i64} {
  func.func @_no_query_kernel(%arg0: i32, %arg1: memref<2x8x32xf32, #tpu.memory_space<vmem>>, %arg2: memref<1x32xf32, #tpu.memory_space<vmem>>, %arg3: memref<1xf32, #tpu.memory_space<smem>>, %arg4: memref<2x8xi32, #tpu.memory_space<vmem>>, %arg5: memref<2x8xf32, #tpu.memory_space<vmem>>) attributes {dimension_semantics = [#tpu.dimension_semantics<parallel>], iteration_bounds = array<i64: 1>, scalar_prefetch = 0 : i64, scratch_operands = 0 : i64, tpu.core_type = #tpu.core_type<tc>, window_params = [{transform_indices = @transform_0, window_bounds = array<i64: 2, 8, 32>}, {pipeline_mode = #tpu.pipeline_mode<synchronous>, transform_indices = @transform_1, window_bounds = array<i64: 1, 32>}, {transform_indices = @transform_2, window_bounds = array<i64: 1>}, {transform_indices = @transform_3, window_bounds = array<i64: 2, 8>}, {transform_indices = @transform_4, window_bounds = array<i64: 2, 8>}]} {
    %c0 = arith.constant 0 : index
    %c0_0 = arith.constant 0 : index
    %c0_1 = arith.constant 0 : index
    %0 = vector.load %arg1[%c0, %c0_0, %c0_1] : memref<2x8x32xf32, #tpu.memory_space<vmem>>, vector<2x8x32xf32>
    %c0_2 = arith.constant 0 : index
    %c0_3 = arith.constant 0 : index
    %1 = vector.load %arg2[%c0_2, %c0_3] : memref<1x32xf32, #tpu.memory_space<vmem>>, vector<1x32xf32>
    %2 = vector.shape_cast %1 : vector<1x32xf32> to vector<1x1x32xf32>
    %3 = vector.broadcast %2 : vector<1x1x32xf32> to vector<2x8x32xf32>
    %4 = arith.mulf %0, %3 : vector<2x8x32xf32>
    %cst = arith.constant dense<0.000000e+00> : vector<2x8xf32>
    %5 = vector.multi_reduction <add>, %4, %cst [2] : vector<2x8x32xf32> to vector<2x8xf32>
    %c0_4 = arith.constant 0 : index
    %6 = memref.load %arg3[%c0_4] : memref<1xf32, #tpu.memory_space<smem>>
    %7 = vector.broadcast %6 : f32 to vector<2x8xf32>
    %8 = arith.addf %5, %7 : vector<2x8xf32>
    %c0_5 = arith.constant 0 : index
    %c0_6 = arith.constant 0 : index
    %9 = vector.load %arg4[%c0_5, %c0_6] : memref<2x8xi32, #tpu.memory_space<vmem>>, vector<2x8xi32>
    %c0_i32 = arith.constant 0 : i32
    %10 = vector.broadcast %c0_i32 : i32 to vector<2x8xi32>
    %11 = arith.cmpi ne, %9, %10 : vector<2x8xi32>
    %cst_7 = arith.constant 0xFF800000 : f32
    %12 = vector.broadcast %cst_7 : f32 to vector<2x8xf32>
    %13 = arith.select %11, %12, %8 : vector<2x8xi1>, vector<2x8xf32>
    %cst_8 = arith.constant dense<0xFF800000> : vector<2xf32>
    %14 = vector.multi_reduction <maximumf>, %13, %cst_8 [1] : vector<2x8xf32> to vector<2xf32>
    %15 = vector.shape_cast %14 : vector<2xf32> to vector<2x1xf32>
    %16 = vector.broadcast %15 : vector<2x1xf32> to vector<2x8xf32>
    %17 = arith.subf %13, %16 : vector<2x8xf32>
    %18 = math.exp %17 : vector<2x8xf32>
    %cst_9 = arith.constant dense<0.000000e+00> : vector<2xf32>
    %19 = vector.multi_reduction <add>, %18, %cst_9 [1] : vector<2x8xf32> to vector<2xf32>
    %20 = vector.shape_cast %19 : vector<2xf32> to vector<2x1xf32>
    %21 = tpu.reciprocal %20 {approx = true} : vector<2x1xf32> -> vector<2x1xf32>
    %22 = vector.broadcast %21 : vector<2x1xf32> to vector<2x8xf32>
    %23 = arith.mulf %18, %22 : vector<2x8xf32>
    %cst_10 = arith.constant 0.000000e+00 : f32
    %24 = vector.broadcast %cst_10 : f32 to vector<2x8xf32>
    %25 = arith.select %11, %24, %23 : vector<2x8xi1>, vector<2x8xf32>
    %c0_11 = arith.constant 0 : index
    %c0_12 = arith.constant 0 : index
    %26 = vector.load %arg5[%c0_11, %c0_12] : memref<2x8xf32, #tpu.memory_space<vmem>>, vector<2x8xf32>
    tpu.vector_store %arg5[%c0_11, %c0_12], %25 {strides = array<i32>} : memref<2x8xf32, #tpu.memory_space<vmem>>, vector<2x8xf32>,
    return
  }
  func.func @transform_0(%arg0: i32) -> (i32, i32, i32) {
    %c0_i32 = arith.constant 0 : i32
    %c0_i32_0 = arith.constant 0 : i32
    %c0_i32_1 = arith.constant 0 : i32
    return %arg0, %c0_i32, %c0_i32_0 : i32, i32, i32
  }
  func.func @transform_1(%arg0: i32) -> (i32, i32) {
    %c0_i32 = arith.constant 0 : i32
    %c0_i32_0 = arith.constant 0 : i32
    %c0_i32_1 = arith.constant 0 : i32
    return %c0_i32, %c0_i32_0 : i32, i32
  }
  func.func @transform_2(%arg0: i32) -> i32 {
    %c0_i32 = arith.constant 0 : i32
    %c0_i32_0 = arith.constant 0 : i32
    return %c0_i32 : i32
  }
  func.func @transform_3(%arg0: i32) -> (i32, i32) {
    %c0_i32 = arith.constant 0 : i32
    %c0_i32_0 = arith.constant 0 : i32
    return %arg0, %c0_i32 : i32, i32
  }
  func.func @transform_4(%arg0: i32) -> (i32, i32) {
    %c0_i32 = arith.constant 0 : i32
    %c0_i32_0 = arith.constant 0 : i32
    return %arg0, %c0_i32 : i32, i32
  }
}

</mosaic_0001>

<bundles_post_ra>
// kernel: tpu_custom_call.1
= control target key start
LH: loop header
LB: loop body
LE: loop exit
PB: predicated region body
PF: predicated region fallthrough
CT: control target
= control target key end

     0   :  { %10 = vsyncpa [#allocation4], 0  ;;  %s226_s0 = inlined_call_operand.hbm [shape: f32[2,8,32], index: 0, kind: input, shape index: {}]   ;;  %s227_s1 = inlined_call_operand.vmem [shape: f32[1,32], index: 1, kind: input, shape index: {}]   ;;  %s228_s2 = inlined_call_operand.<no memory space> [shape: f32[1], index: 2, kind: input, shape index: {}]   ;;  %s229_s3 = inlined_call_operand.vmem [shape: s32[2,8], index: 3, kind: input, shape index: {}]   ;;  %s230_s4 = inlined_call_operand.hbm [shape: f32[2,8], index: 4, kind: output, shape index: {}]  }
   0x1   :  { %11 = vsyncpa [#allocation5], 0  ;;  %s159_s15 = smov [#allocation3]   ;;  %s111_s19 = scalar_lea.hbm %s226_s0, 256 }
   0x2   :  { %s17_s16 = sshll.u32 %s159_s15, 4  ;;  %p112_p0 = scmp.ne.s32.totalorder %s226_s0, %s111_s19  ;;  %s18_s16 = int_to_ptr.vmem [resolvable:$true] %s17_s16 }
   0x3   :  { %p115_p1 = scmp.lt.u32.totalorder %s111_s19, %s226_s0 }
   0x5   :  { %p117_p2 = pnand %p115_p1, %p112_p0 }
   0x7   :  { %120 = shalt.err (!%p117_p2)
}
   0x8   :  { %s121_s24 = scalar_lea.vmem %s18_s16, 256  ;;  %p126_p4 = scmp.lt.s32.totalorder %s18_s16, %s18_s16 }
   0x9   :  { %p122_p3 = scmp.ne.s32.totalorder %s18_s16, %s121_s24  ;;  %p127_p5 = scmp.lt.s32.totalorder %s121_s24, %s121_s24 }
   0xb   :  { %p128_p6 = por %p127_p5, %p126_p4 }
   0xd   :  { %p129_p7 = pnand %p128_p6, %p122_p3 }
   0xf   :  { %132 = shalt.err (!%p129_p7)
}
  0x10   :  { %s160_s25 = smov 128   ;;  %s161_s26 = smov 8  }
  0x11   :  { %23 = dma.hbm_to_vmem [thread:$0]  %s226_s0, 256, %s18_s16, [#allocation4], %s160_s25, %s160_s25, %s161_s26  }
  0x12   :  { %155 = dma.done.wait [#allocation4], 256  }
  0x13   :  { %156 = vsyncadd [#allocation4], 4294967040  ;;  %v33_v0 = vld [vmem:[#allocation3] sm:$0xff]  ;;  %vm44_vm0 = vcmask 261120   ;;  %v34_v2 = vld [vmem:[#allocation3 + $0x8] sm:$0xff]  ;;  %v59_v7 = vlaneseq  ;;  %v52_v10 = vstv %s228_s2  ;;  %vm69_vm1 = vcmask 1041409  }
  0x14   :  { %v102_v1 = vld [vmem:[%s227_s1] ss:$0 sm:$0xff]  ;;  %vm73_vm3 = vcmask 58368   ;;  %s162_s2 = smov [#allocation6]  }
  0x15   :  { %v42_v3 = vmul.f32 %v102_v1, %v33_v0  ;;  %v43_v4 = vmul.f32 %v102_v1, %v34_v2  ;;  %v60_v8 = vand.u32 127, %v59_v7  ;;  %v62_v9 = vshrl.u32 %v59_v7, 7  ;;  %v55_v15 = vld [vmem:[%s229_s3] sm:$0x3]  ;;  %s93_s3 = sshll.u32 %s162_s2, 4  ;;  %s94_s3 = int_to_ptr.vmem [resolvable:$true] %s93_s3 }
  0x16   :  { %vm56_vm2 = vcmp.ne.s32.totalorder %v55_v15, 0  ;;  %s133_s7 = scalar_lea.vmem %s94_s3, 32  ;;  %p138_p9 = scmp.lt.s32.totalorder %s94_s3, %s94_s3 }
  0x17   :  { %v45_v5 = vsel %vm44_vm0, %v42_v3, 0.0  ;;  %v48_v6 = vsel %vm44_vm0, %v43_v4, 0.0  ;;  %v63_v12 = vsub.s32 %v60_v8, %v62_v9  ;;  %p134_p8 = scmp.ne.s32.totalorder %s94_s3, %s133_s7  ;;  %p139_p10 = scmp.lt.s32.totalorder %s133_s7, %s133_s7 }
  0x18   :  { %46 = vadd.xlane.f32.xlu0 %v45_v5 }
  0x19   :  { %p140_p11 = por %p139_p10, %p138_p9 }
  0x1b   :  { %p141_p12 = pnand %p140_p11, %p134_p8 }
  0x1c   :  { %49 = vadd.xlane.f32.xlu0 %v48_v6 }
  0xa5   :  { %v47_v11 = vpop.xlane.xlu0 %46 }
  0xa6   :  { %v53_v13 = vadd.f32 %v52_v10, %v47_v11 }
  0xa8   :  { %v64_v17 = vrot.slane %v53_v13, %v63_v12 }
  0xa9   :  { %v50_v14 = vpop.xlane.xlu0 %49 }
  0xaa   :  { %v54_v16 = vadd.f32 %v52_v10, %v50_v14 }
  0xac   :  { %v68_v18 = vrot.slane %v54_v16, %v63_v12 }
  0xae   :  { %v70_v19 = vsel %vm69_vm1, %v68_v18, %v64_v17 }
  0xaf   :  { %v72_v20 = vsel %vm56_vm2, -inf, %v70_v19 }
  0xb0   :  { %v74_v21 = vsel %vm73_vm3, %v72_v20, -inf }
  0xb1   :  { %75 = vmax.xlane.f32.xlu1 %v74_v21 }
 0x13e   :  { %v76_v22 = vpop.xlane.xlu1 %75 }
 0x13f   :  { %v77_v23 = vsub.f32 %v72_v20, %v76_v22 }
 0x141   :  { %v78_v24 = vmul.f32 1.442695, %v77_v23 }
 0x143   :  { %107 = vpow2.f32 %v78_v24 }
 0x14d   :  { %v108_v25 = vpop.eup %107 }
 0x14e   :  { %v80_v26 = vsel %vm73_vm3, %v108_v25, 0.0 }
 0x14f   :  { %81 = vadd.xlane.f32.xlu1 %v80_v26 }
 0x1dc   :  { %v82_v27 = vpop.xlane.xlu1 %81 }
 0x1dd   :  { %109 = vrcp.f32 %v82_v27 }
 0x1e7   :  { %v110_v28 = vpop.eup %109 }
 0x1e8   :  { %v84_v29 = vmul.f32 %v110_v28, %v108_v25 }
 0x1ea   :  { %v85_v30 = vsel %vm56_vm2, 0.0, %v84_v29 }
 0x1eb   :  { %86 = vst.msk [vmem:[#allocation6] sm:$0x3] %vm73_vm3, %v85_v30 }
 0x1ec   :  { %144 = shalt.err (!%p141_p12)
}
 0x1ed   :  { %s145_s10 = scalar_lea.hbm %s230_s4, 32 }
 0x1ee   :  { %p146_p13 = scmp.ne.s32.totalorder %s230_s4, %s145_s10  ;;  %p149_p0 = scmp.lt.u32.totalorder %s145_s10, %s230_s4 }
 0x1f0   :  { %p151_p1 = pnand %p149_p0, %p146_p13 }
 0x1f2   :  { %154 = shalt.err (!%p151_p1)
}
 0x1f3   :  { %96 = dma.vmem_to_hbm [thread:$0]  %s94_s3, 32, %s230_s4, [#allocation5]  }
 0x1f4   :  { %157 = dma.done.wait [#allocation5], 32  }
 0x1f5   :  { %158 = vsyncadd [#allocation5], 4294967264 }
 0x1f6   :  { %100 = vsyncpa [#allocation4], 1 }
 0x1f7   :  { %101 = vsyncpa [#allocation5], 1 }

</bundles_post_ra>
